<compile_context>
chip_gen: v5e
topology: v5e:2x2
jax: 0.10.0
libtpu: 0.0.40
codegen_flags: <defaults>
</compile_context>

<pallas_src>
import jax
import jax.numpy as jnp
from jax.experimental import pallas as pl
from jax.experimental.pallas import tpu as pltpu


def _round_up(x, m):
    return ((x + m - 1) // m) * m


def _make_kernel(D, tk, k_tiles, tn, n_valid, has_pad):
    """Build the kernel body; all arguments are trace-time constants."""

    def kernel(x_ref, c_ref, nw_ref, o_ref):
        # x_ref : (D, tb, tn)  VMEM  -- point coords, N on the lane axis
        # c_ref : (D, K_pad)   SMEM  -- centres
        # nw_ref: (D, K_pad)   SMEM  -- -(sharpness**2)
        # o_ref : (tb, tk)     VMEM  -- resident accumulator / output block
        n_step = pl.program_id(2)
        j = pl.program_id(1)

        @pl.when(n_step == 0)
        def _init():
            o_ref[...] = jnp.zeros_like(o_ref)

        # Per-(b, n) quantities, shared by every structure element k.
        xs = [x_ref[d] for d in range(D)]                 # (tb, tn) each
        nan_mask = [jnp.isnan(xd) for xd in xs]           # torch.nansum over D

        if has_pad:
            # Zero out contributions from points that are pure N-padding.
            lane = jax.lax.broadcasted_iota(jnp.int32, (1, tn), 1)
            valid = ((n_step * tn + lane) < n_valid).astype(jnp.float32)

        cols = []
        for kk in range(tk):                              # small, unrolled
            kg = kk if k_tiles == 1 else j * tk + kk      # global element id
            t = None
            for d in range(D):
                diff = c_ref[d, kg] - xs[d]               # (tb, tn)  VPU
                term = jnp.where(nan_mask[d], 0.0,
                                 (diff * diff) * nw_ref[d, kg])
                t = term if t is None else t + term
            e = jnp.exp(t)                                # EUP (free slot)
            if has_pad:
                e = e * valid
            cols.append(jnp.sum(e, axis=-1, keepdims=True))   # (tb, 1)  XLU
        o_ref[...] += jnp.concatenate(cols, axis=-1)      # (tb, tk)

    return kernel


def structure_element_forward(x, centres, sharpness):
    """x: (B, N, D); centres, sharpness: (K, D). Returns squeeze of (B, K)."""
    B, N, D = x.shape
    K = centres.shape[0]

    # ---- tile sizes: lane-dense tn (multiple of 128), sublane-friendly tb/tk.
    tb = min(64, _round_up(B, 8))
    B_pad = _round_up(B, tb)
    tn = min(512, _round_up(N, 128))
    N_pad = _round_up(N, tn)
    if K <= 128:
        K_pad = _round_up(K, 8)
        tk = K_pad                      # single K tile (block == full dim)
    else:
        K_pad = _round_up(K, 128)
        tk = 128
    k_tiles = K_pad // tk
    has_pad = N_pad != N

    # ---- wrapper glue: layout + padding (padded rows/cols are sliced off).
    x_t = jnp.transpose(x.astype(jnp.float32), (2, 0, 1))        # (D, B, N)
    x_t = jnp.pad(x_t, ((0, 0), (0, B_pad - B), (0, N_pad - N)))
    c_t = jnp.pad(jnp.transpose(centres.astype(jnp.float32), (1, 0)),
                  ((0, 0), (0, K_pad - K)))                      # (D, K_pad)
    s32 = sharpness.astype(jnp.float32)
    nw_t = jnp.pad(jnp.transpose(-(s32 * s32), (1, 0)),
                   ((0, 0), (0, K_pad - K)))                     # (D, K_pad)

    grid = (B_pad // tb, k_tiles, N_pad // tn)
    kernel = _make_kernel(D, tk, k_tiles, tn, N, has_pad)

    cost = pl.CostEstimate(
        flops=9 * B * K * N,
        transcendentals=B * K * N,
        bytes_accessed=4 * (D * B * N + 2 * D * K + B * K),
    )

    out = pl.pallas_call(
        kernel,
        out_shape=jax.ShapeDtypeStruct((B_pad, K_pad), jnp.float32),
        grid=grid,
        in_specs=[
            pl.BlockSpec((D, tb, tn), lambda i, j, n: (0, i, n)),
            pl.BlockSpec(memory_space=pltpu.MemorySpace.SMEM),
            pl.BlockSpec(memory_space=pltpu.MemorySpace.SMEM),
        ],
        out_specs=pl.BlockSpec((tb, tk), lambda i, j, n: (i, j)),
        compiler_params=pltpu.CompilerParams(
            dimension_semantics=("parallel", "parallel", "arbitrary")),
        cost_estimate=cost,
    )(x_t, c_t, nw_t)

    # Matches the trailing torch .squeeze()
    return jnp.squeeze(out[:B, :K])


def structure_element_reference(x, centres, sharpness):
    """Pure-JAX reference mirroring the PyTorch code path exactly."""
    diff = centres[None, :, None, :] - x[:, None, :, :]          # (B, K, N, D)
    t = diff * diff * (sharpness * sharpness)[None, :, None, :]  # (B, K, N, D)
    t = jnp.where(jnp.isnan(t), 0.0, t)                          # nansum over D
    s = jnp.sum(t, axis=-1)                                      # (B, K, N)
    out = jnp.sum(jnp.exp(-s), axis=-1)                          # (B, K)
    return jnp.squeeze(out)


if __name__ == "__main__":
    # Module config: n_elements structure elements in dim=2.
    n_elements = 4
    dim = 2
    B, N = 2, 8  # batch of point sets, each with N points of dimension 2

    key = jax.random.PRNGKey(0)
    k_x, k_c = jax.random.split(key)

    # Deterministic parameter init matching __init__:
    #   centres   ~ U[0, 1) of shape (n_elements, dim)
    #   sharpness = ones(n_elements, dim) * 3
    centres = jax.random.uniform(k_c, (n_elements, dim), dtype=jnp.float32)
    sharpness = jnp.ones((n_elements, dim), dtype=jnp.float32) * 3.0

    # Input point cloud x: (B, N, D); include NaNs to exercise the nansum path.
    x = jax.random.normal(k_x, (B, N, dim), dtype=jnp.float32)
    x = x.at[0, 3, 1].set(jnp.nan).at[1, 5, 0].set(jnp.nan)

    out = structure_element_forward(x, centres, sharpness)
    out = jax.block_until_ready(out)

    ref = structure_element_reference(x, centres, sharpness)
    assert out.shape == ref.shape, (out.shape, ref.shape)
    assert jnp.allclose(out, ref, rtol=1e-5, atol=1e-5), (out, ref)

    print("KERNEL_OK")
</pallas_src>

<mosaic_0001>
module attributes {stable_mosaic.version = 11 : i64} {
  func.func @kernel(%arg0: i32, %arg1: i32, %arg2: i32, %arg3: memref<2x8x128xf32, #tpu.memory_space<vmem>>, %arg4: memref<2x8xf32, #tpu.memory_space<smem>>, %arg5: memref<2x8xf32, #tpu.memory_space<smem>>, %arg6: memref<8x8xf32, #tpu.memory_space<vmem>>) attributes {dimension_semantics = [#tpu.dimension_semantics<parallel>, #tpu.dimension_semantics<parallel>, #tpu.dimension_semantics<arbitrary>], iteration_bounds = array<i64: 1, 1, 1>, scalar_prefetch = 0 : i64, scratch_operands = 0 : i64, tpu.core_type = #tpu.core_type<tc>, window_params = [{transform_indices = @transform_0, window_bounds = array<i64: 2, 8, 128>}, {transform_indices = @transform_1, window_bounds = array<i64: 2, 8>}, {transform_indices = @transform_2, window_bounds = array<i64: 2, 8>}, {transform_indices = @transform_3, window_bounds = array<i64: 8, 8>}]} {
    %c0_i32 = arith.constant 0 : i32
    %0 = arith.cmpi eq, %arg2, %c0_i32 : i32
    %1 = arith.extui %0 : i1 to i32
    %c0_i32_0 = arith.constant 0 : i32
    %2 = arith.cmpi ne, %1, %c0_i32_0 : i32
    scf.if %2 {
      %cst_90 = arith.constant 0.000000e+00 : f32
      %213 = vector.broadcast %cst_90 : f32 to vector<8x8xf32>
      %c0_91 = arith.constant 0 : index
      %c0_92 = arith.constant 0 : index
      %214 = vector.load %arg6[%c0_91, %c0_92] : memref<8x8xf32, #tpu.memory_space<vmem>>, vector<8x8xf32>
      tpu.vector_store %arg6[%c0_91, %c0_92], %213 {strides = array<i32>} : memref<8x8xf32, #tpu.memory_space<vmem>>, vector<8x8xf32>,
    } else {
    }
    %c0 = arith.constant 0 : index
    %c0_1 = arith.constant 0 : index
    %c0_2 = arith.constant 0 : index
    %3 = vector.load %arg3[%c0, %c0_1, %c0_2] : memref<2x8x128xf32, #tpu.memory_space<vmem>>, vector<1x8x128xf32>
    %4 = vector.shape_cast %3 : vector<1x8x128xf32> to vector<8x128xf32>
    %c1 = arith.constant 1 : index
    %c0_3 = arith.constant 0 : index
    %c0_4 = arith.constant 0 : index
    %5 = vector.load %arg3[%c1, %c0_3, %c0_4] : memref<2x8x128xf32, #tpu.memory_space<vmem>>, vector<1x8x128xf32>
    %6 = vector.shape_cast %5 : vector<1x8x128xf32> to vector<8x128xf32>
    %7 = arith.cmpf one, %4, %4 : vector<8x128xf32>
    %8 = arith.cmpf one, %6, %6 : vector<8x128xf32>
    %9 = tpu.iota {dimensions = array<i32: 1>} : vector<1x128xi32>
    %c128_i32 = arith.constant 128 : i32
    %10 = arith.muli %arg2, %c128_i32 : i32
    %11 = vector.broadcast %10 : i32 to vector<1x128xi32>
    %12 = arith.addi %11, %9 : vector<1x128xi32>
    %c8_i32 = arith.constant 8 : i32
    %13 = vector.broadcast %c8_i32 : i32 to vector<1x128xi32>
    %14 = arith.cmpi slt, %12, %13 : vector<1x128xi32>
    %15 = arith.extui %14 : vector<1x128xi1> to vector<1x128xi32>
    %16 = arith.sitofp %15 : vector<1x128xi32> to vector<1x128xf32>
    %c0_5 = arith.constant 0 : index
    %c0_6 = arith.constant 0 : index
    %17 = memref.load %arg4[%c0_5, %c0_6] : memref<2x8xf32, #tpu.memory_space<smem>>
    %18 = vector.broadcast %17 : f32 to vector<8x128xf32>
    %19 = arith.subf %18, %4 : vector<8x128xf32>
    %20 = arith.mulf %19, %19 : vector<8x128xf32>
    %c0_7 = arith.constant 0 : index
    %c0_8 = arith.constant 0 : index
    %21 = memref.load %arg5[%c0_7, %c0_8] : memref<2x8xf32, #tpu.memory_space<smem>>
    %22 = vector.broadcast %21 : f32 to vector<8x128xf32>
    %23 = arith.mulf %20, %22 : vector<8x128xf32>
    %cst = arith.constant 0.000000e+00 : f32
    %24 = vector.broadcast %cst : f32 to vector<8x128xf32>
    %25 = arith.select %7, %24, %23 : vector<8x128xi1>, vector<8x128xf32>
    %c1_9 = arith.constant 1 : index
    %c0_10 = arith.constant 0 : index
    %26 = memref.load %arg4[%c1_9, %c0_10] : memref<2x8xf32, #tpu.memory_space<smem>>
    %27 = vector.broadcast %26 : f32 to vector<8x128xf32>
    %28 = arith.subf %27, %6 : vector<8x128xf32>
    %29 = arith.mulf %28, %28 : vector<8x128xf32>
    %c1_11 = arith.constant 1 : index
    %c0_12 = arith.constant 0 : index
    %30 = memref.load %arg5[%c1_11, %c0_12] : memref<2x8xf32, #tpu.memory_space<smem>>
    %31 = vector.broadcast %30 : f32 to vector<8x128xf32>
    %32 = arith.mulf %29, %31 : vector<8x128xf32>
    %cst_13 = arith.constant 0.000000e+00 : f32
    %33 = vector.broadcast %cst_13 : f32 to vector<8x128xf32>
    %34 = arith.select %8, %33, %32 : vector<8x128xi1>, vector<8x128xf32>
    %35 = arith.addf %25, %34 : vector<8x128xf32>
    %36 = math.exp %35 : vector<8x128xf32>
    %37 = vector.broadcast %16 : vector<1x128xf32> to vector<8x128xf32>
    %38 = arith.mulf %36, %37 : vector<8x128xf32>
    %cst_14 = arith.constant dense<0.000000e+00> : vector<8xf32>
    %39 = vector.multi_reduction <add>, %38, %cst_14 [1] : vector<8x128xf32> to vector<8xf32>
    %40 = vector.shape_cast %39 : vector<8xf32> to vector<8x1xf32>
    %c0_15 = arith.constant 0 : index
    %c1_16 = arith.constant 1 : index
    %41 = memref.load %arg4[%c0_15, %c1_16] : memref<2x8xf32, #tpu.memory_space<smem>>
    %42 = vector.broadcast %41 : f32 to vector<8x128xf32>
    %43 = arith.subf %42, %4 : vector<8x128xf32>
    %44 = arith.mulf %43, %43 : vector<8x128xf32>
    %c0_17 = arith.constant 0 : index
    %c1_18 = arith.constant 1 : index
    %45 = memref.load %arg5[%c0_17, %c1_18] : memref<2x8xf32, #tpu.memory_space<smem>>
    %46 = vector.broadcast %45 : f32 to vector<8x128xf32>
    %47 = arith.mulf %44, %46 : vector<8x128xf32>
    %cst_19 = arith.constant 0.000000e+00 : f32
    %48 = vector.broadcast %cst_19 : f32 to vector<8x128xf32>
    %49 = arith.select %7, %48, %47 : vector<8x128xi1>, vector<8x128xf32>
    %c1_20 = arith.constant 1 : index
    %c1_21 = arith.constant 1 : index
    %50 = memref.load %arg4[%c1_20, %c1_21] : memref<2x8xf32, #tpu.memory_space<smem>>
    %51 = vector.broadcast %50 : f32 to vector<8x128xf32>
    %52 = arith.subf %51, %6 : vector<8x128xf32>
    %53 = arith.mulf %52, %52 : vector<8x128xf32>
    %c1_22 = arith.constant 1 : index
    %c1_23 = arith.constant 1 : index
    %54 = memref.load %arg5[%c1_22, %c1_23] : memref<2x8xf32, #tpu.memory_space<smem>>
    %55 = vector.broadcast %54 : f32 to vector<8x128xf32>
    %56 = arith.mulf %53, %55 : vector<8x128xf32>
    %cst_24 = arith.constant 0.000000e+00 : f32
    %57 = vector.broadcast %cst_24 : f32 to vector<8x128xf32>
    %58 = arith.select %8, %57, %56 : vector<8x128xi1>, vector<8x128xf32>
    %59 = arith.addf %49, %58 : vector<8x128xf32>
    %60 = math.exp %59 : vector<8x128xf32>
    %61 = vector.broadcast %16 : vector<1x128xf32> to vector<8x128xf32>
    %62 = arith.mulf %60, %61 : vector<8x128xf32>
    %cst_25 = arith.constant dense<0.000000e+00> : vector<8xf32>
    %63 = vector.multi_reduction <add>, %62, %cst_25 [1] : vector<8x128xf32> to vector<8xf32>
    %64 = vector.shape_cast %63 : vector<8xf32> to vector<8x1xf32>
    %c0_26 = arith.constant 0 : index
    %c2 = arith.constant 2 : index
    %65 = memref.load %arg4[%c0_26, %c2] : memref<2x8xf32, #tpu.memory_space<smem>>
    %66 = vector.broadcast %65 : f32 to vector<8x128xf32>
    %67 = arith.subf %66, %4 : vector<8x128xf32>
    %68 = arith.mulf %67, %67 : vector<8x128xf32>
    %c0_27 = arith.constant 0 : index
    %c2_28 = arith.constant 2 : index
    %69 = memref.load %arg5[%c0_27, %c2_28] : memref<2x8xf32, #tpu.memory_space<smem>>
    %70 = vector.broadcast %69 : f32 to vector<8x128xf32>
    %71 = arith.mulf %68, %70 : vector<8x128xf32>
    %cst_29 = arith.constant 0.000000e+00 : f32
    %72 = vector.broadcast %cst_29 : f32 to vector<8x128xf32>
    %73 = arith.select %7, %72, %71 : vector<8x128xi1>, vector<8x128xf32>
    %c1_30 = arith.constant 1 : index
    %c2_31 = arith.constant 2 : index
    %74 = memref.load %arg4[%c1_30, %c2_31] : memref<2x8xf32, #tpu.memory_space<smem>>
    %75 = vector.broadcast %74 : f32 to vector<8x128xf32>
    %76 = arith.subf %75, %6 : vector<8x128xf32>
    %77 = arith.mulf %76, %76 : vector<8x128xf32>
    %c1_32 = arith.constant 1 : index
    %c2_33 = arith.constant 2 : index
    %78 = memref.load %arg5[%c1_32, %c2_33] : memref<2x8xf32, #tpu.memory_space<smem>>
    %79 = vector.broadcast %78 : f32 to vector<8x128xf32>
    %80 = arith.mulf %77, %79 : vector<8x128xf32>
    %cst_34 = arith.constant 0.000000e+00 : f32
    %81 = vector.broadcast %cst_34 : f32 to vector<8x128xf32>
    %82 = arith.select %8, %81, %80 : vector<8x128xi1>, vector<8x128xf32>
    %83 = arith.addf %73, %82 : vector<8x128xf32>
    %84 = math.exp %83 : vector<8x128xf32>
    %85 = vector.broadcast %16 : vector<1x128xf32> to vector<8x128xf32>
    %86 = arith.mulf %84, %85 : vector<8x128xf32>
    %cst_35 = arith.constant dense<0.000000e+00> : vector<8xf32>
    %87 = vector.multi_reduction <add>, %86, %cst_35 [1] : vector<8x128xf32> to vector<8xf32>
    %88 = vector.shape_cast %87 : vector<8xf32> to vector<8x1xf32>
    %c0_36 = arith.constant 0 : index
    %c3 = arith.constant 3 : index
    %89 = memref.load %arg4[%c0_36, %c3] : memref<2x8xf32, #tpu.memory_space<smem>>
    %90 = vector.broadcast %89 : f32 to vector<8x128xf32>
    %91 = arith.subf %90, %4 : vector<8x128xf32>
    %92 = arith.mulf %91, %91 : vector<8x128xf32>
    %c0_37 = arith.constant 0 : index
    %c3_38 = arith.constant 3 : index
    %93 = memref.load %arg5[%c0_37, %c3_38] : memref<2x8xf32, #tpu.memory_space<smem>>
    %94 = vector.broadcast %93 : f32 to vector<8x128xf32>
    %95 = arith.mulf %92, %94 : vector<8x128xf32>
    %cst_39 = arith.constant 0.000000e+00 : f32
    %96 = vector.broadcast %cst_39 : f32 to vector<8x128xf32>
    %97 = arith.select %7, %96, %95 : vector<8x128xi1>, vector<8x128xf32>
    %c1_40 = arith.constant 1 : index
    %c3_41 = arith.constant 3 : index
    %98 = memref.load %arg4[%c1_40, %c3_41] : memref<2x8xf32, #tpu.memory_space<smem>>
    %99 = vector.broadcast %98 : f32 to vector<8x128xf32>
    %100 = arith.subf %99, %6 : vector<8x128xf32>
    %101 = arith.mulf %100, %100 : vector<8x128xf32>
    %c1_42 = arith.constant 1 : index
    %c3_43 = arith.constant 3 : index
    %102 = memref.load %arg5[%c1_42, %c3_43] : memref<2x8xf32, #tpu.memory_space<smem>>
    %103 = vector.broadcast %102 : f32 to vector<8x128xf32>
    %104 = arith.mulf %101, %103 : vector<8x128xf32>
    %cst_44 = arith.constant 0.000000e+00 : f32
    %105 = vector.broadcast %cst_44 : f32 to vector<8x128xf32>
    %106 = arith.select %8, %105, %104 : vector<8x128xi1>, vector<8x128xf32>
    %107 = arith.addf %97, %106 : vector<8x128xf32>
    %108 = math.exp %107 : vector<8x128xf32>
    %109 = vector.broadcast %16 : vector<1x128xf32> to vector<8x128xf32>
    %110 = arith.mulf %108, %109 : vector<8x128xf32>
    %cst_45 = arith.constant dense<0.000000e+00> : vector<8xf32>
    %111 = vector.multi_reduction <add>, %110, %cst_45 [1] : vector<8x128xf32> to vector<8xf32>
    %112 = vector.shape_cast %111 : vector<8xf32> to vector<8x1xf32>
    %c0_46 = arith.constant 0 : index
    %c4 = arith.constant 4 : index
    %113 = memref.load %arg4[%c0_46, %c4] : memref<2x8xf32, #tpu.memory_space<smem>>
    %114 = vector.broadcast %113 : f32 to vector<8x128xf32>
    %115 = arith.subf %114, %4 : vector<8x128xf32>
    %116 = arith.mulf %115, %115 : vector<8x128xf32>
    %c0_47 = arith.constant 0 : index
    %c4_48 = arith.constant 4 : index
    %117 = memref.load %arg5[%c0_47, %c4_48] : memref<2x8xf32, #tpu.memory_space<smem>>
    %118 = vector.broadcast %117 : f32 to vector<8x128xf32>
    %119 = arith.mulf %116, %118 : vector<8x128xf32>
    %cst_49 = arith.constant 0.000000e+00 : f32
    %120 = vector.broadcast %cst_49 : f32 to vector<8x128xf32>
    %121 = arith.select %7, %120, %119 : vector<8x128xi1>, vector<8x128xf32>
    %c1_50 = arith.constant 1 : index
    %c4_51 = arith.constant 4 : index
    %122 = memref.load %arg4[%c1_50, %c4_51] : memref<2x8xf32, #tpu.memory_space<smem>>
    %123 = vector.broadcast %122 : f32 to vector<8x128xf32>
    %124 = arith.subf %123, %6 : vector<8x128xf32>
    %125 = arith.mulf %124, %124 : vector<8x128xf32>
    %c1_52 = arith.constant 1 : index
    %c4_53 = arith.constant 4 : index
    %126 = memref.load %arg5[%c1_52, %c4_53] : memref<2x8xf32, #tpu.memory_space<smem>>
    %127 = vector.broadcast %126 : f32 to vector<8x128xf32>
    %128 = arith.mulf %125, %127 : vector<8x128xf32>
    %cst_54 = arith.constant 0.000000e+00 : f32
    %129 = vector.broadcast %cst_54 : f32 to vector<8x128xf32>
    %130 = arith.select %8, %129, %128 : vector<8x128xi1>, vector<8x128xf32>
    %131 = arith.addf %121, %130 : vector<8x128xf32>
    %132 = math.exp %131 : vector<8x128xf32>
    %133 = vector.broadcast %16 : vector<1x128xf32> to vector<8x128xf32>
    %134 = arith.mulf %132, %133 : vector<8x128xf32>
    %cst_55 = arith.constant dense<0.000000e+00> : vector<8xf32>
    %135 = vector.multi_reduction <add>, %134, %cst_55 [1] : vector<8x128xf32> to vector<8xf32>
    %136 = vector.shape_cast %135 : vector<8xf32> to vector<8x1xf32>
    %c0_56 = arith.constant 0 : index
    %c5 = arith.constant 5 : index
    %137 = memref.load %arg4[%c0_56, %c5] : memref<2x8xf32, #tpu.memory_space<smem>>
    %138 = vector.broadcast %137 : f32 to vector<8x128xf32>
    %139 = arith.subf %138, %4 : vector<8x128xf32>
    %140 = arith.mulf %139, %139 : vector<8x128xf32>
    %c0_57 = arith.constant 0 : index
    %c5_58 = arith.constant 5 : index
    %141 = memref.load %arg5[%c0_57, %c5_58] : memref<2x8xf32, #tpu.memory_space<smem>>
    %142 = vector.broadcast %141 : f32 to vector<8x128xf32>
    %143 = arith.mulf %140, %142 : vector<8x128xf32>
    %cst_59 = arith.constant 0.000000e+00 : f32
    %144 = vector.broadcast %cst_59 : f32 to vector<8x128xf32>
    %145 = arith.select %7, %144, %143 : vector<8x128xi1>, vector<8x128xf32>
    %c1_60 = arith.constant 1 : index
    %c5_61 = arith.constant 5 : index
    %146 = memref.load %arg4[%c1_60, %c5_61] : memref<2x8xf32, #tpu.memory_space<smem>>
    %147 = vector.broadcast %146 : f32 to vector<8x128xf32>
    %148 = arith.subf %147, %6 : vector<8x128xf32>
    %149 = arith.mulf %148, %148 : vector<8x128xf32>
    %c1_62 = arith.constant 1 : index
    %c5_63 = arith.constant 5 : index
    %150 = memref.load %arg5[%c1_62, %c5_63] : memref<2x8xf32, #tpu.memory_space<smem>>
    %151 = vector.broadcast %150 : f32 to vector<8x128xf32>
    %152 = arith.mulf %149, %151 : vector<8x128xf32>
    %cst_64 = arith.constant 0.000000e+00 : f32
    %153 = vector.broadcast %cst_64 : f32 to vector<8x128xf32>
    %154 = arith.select %8, %153, %152 : vector<8x128xi1>, vector<8x128xf32>
    %155 = arith.addf %145, %154 : vector<8x128xf32>
    %156 = math.exp %155 : vector<8x128xf32>
    %157 = vector.broadcast %16 : vector<1x128xf32> to vector<8x128xf32>
    %158 = arith.mulf %156, %157 : vector<8x128xf32>
    %cst_65 = arith.constant dense<0.000000e+00> : vector<8xf32>
    %159 = vector.multi_reduction <add>, %158, %cst_65 [1] : vector<8x128xf32> to vector<8xf32>
    %160 = vector.shape_cast %159 : vector<8xf32> to vector<8x1xf32>
    %c0_66 = arith.constant 0 : index
    %c6 = arith.constant 6 : index
    %161 = memref.load %arg4[%c0_66, %c6] : memref<2x8xf32, #tpu.memory_space<smem>>
    %162 = vector.broadcast %161 : f32 to vector<8x128xf32>
    %163 = arith.subf %162, %4 : vector<8x128xf32>
    %164 = arith.mulf %163, %163 : vector<8x128xf32>
    %c0_67 = arith.constant 0 : index
    %c6_68 = arith.constant 6 : index
    %165 = memref.load %arg5[%c0_67, %c6_68] : memref<2x8xf32, #tpu.memory_space<smem>>
    %166 = vector.broadcast %165 : f32 to vector<8x128xf32>
    %167 = arith.mulf %164, %166 : vector<8x128xf32>
    %cst_69 = arith.constant 0.000000e+00 : f32
    %168 = vector.broadcast %cst_69 : f32 to vector<8x128xf32>
    %169 = arith.select %7, %168, %167 : vector<8x128xi1>, vector<8x128xf32>
    %c1_70 = arith.constant 1 : index
    %c6_71 = arith.constant 6 : index
    %170 = memref.load %arg4[%c1_70, %c6_71] : memref<2x8xf32, #tpu.memory_space<smem>>
    %171 = vector.broadcast %170 : f32 to vector<8x128xf32>
    %172 = arith.subf %171, %6 : vector<8x128xf32>
    %173 = arith.mulf %172, %172 : vector<8x128xf32>
    %c1_72 = arith.constant 1 : index
    %c6_73 = arith.constant 6 : index
    %174 = memref.load %arg5[%c1_72, %c6_73] : memref<2x8xf32, #tpu.memory_space<smem>>
    %175 = vector.broadcast %174 : f32 to vector<8x128xf32>
    %176 = arith.mulf %173, %175 : vector<8x128xf32>
    %cst_74 = arith.constant 0.000000e+00 : f32
    %177 = vector.broadcast %cst_74 : f32 to vector<8x128xf32>
    %178 = arith.select %8, %177, %176 : vector<8x128xi1>, vector<8x128xf32>
    %179 = arith.addf %169, %178 : vector<8x128xf32>
    %180 = math.exp %179 : vector<8x128xf32>
    %181 = vector.broadcast %16 : vector<1x128xf32> to vector<8x128xf32>
    %182 = arith.mulf %180, %181 : vector<8x128xf32>
    %cst_75 = arith.constant dense<0.000000e+00> : vector<8xf32>
    %183 = vector.multi_reduction <add>, %182, %cst_75 [1] : vector<8x128xf32> to vector<8xf32>
    %184 = vector.shape_cast %183 : vector<8xf32> to vector<8x1xf32>
    %c0_76 = arith.constant 0 : index
    %c7 = arith.constant 7 : index
    %185 = memref.load %arg4[%c0_76, %c7] : memref<2x8xf32, #tpu.memory_space<smem>>
    %186 = vector.broadcast %185 : f32 to vector<8x128xf32>
    %187 = arith.subf %186, %4 : vector<8x128xf32>
    %188 = arith.mulf %187, %187 : vector<8x128xf32>
    %c0_77 = arith.constant 0 : index
    %c7_78 = arith.constant 7 : index
    %189 = memref.load %arg5[%c0_77, %c7_78] : memref<2x8xf32, #tpu.memory_space<smem>>
    %190 = vector.broadcast %189 : f32 to vector<8x128xf32>
    %191 = arith.mulf %188, %190 : vector<8x128xf32>
    %cst_79 = arith.constant 0.000000e+00 : f32
    %192 = vector.broadcast %cst_79 : f32 to vector<8x128xf32>
    %193 = arith.select %7, %192, %191 : vector<8x128xi1>, vector<8x128xf32>
    %c1_80 = arith.constant 1 : index
    %c7_81 = arith.constant 7 : index
    %194 = memref.load %arg4[%c1_80, %c7_81] : memref<2x8xf32, #tpu.memory_space<smem>>
    %195 = vector.broadcast %194 : f32 to vector<8x128xf32>
    %196 = arith.subf %195, %6 : vector<8x128xf32>
    %197 = arith.mulf %196, %196 : vector<8x128xf32>
    %c1_82 = arith.constant 1 : index
    %c7_83 = arith.constant 7 : index
    %198 = memref.load %arg5[%c1_82, %c7_83] : memref<2x8xf32, #tpu.memory_space<smem>>
    %199 = vector.broadcast %198 : f32 to vector<8x128xf32>
    %200 = arith.mulf %197, %199 : vector<8x128xf32>
    %cst_84 = arith.constant 0.000000e+00 : f32
    %201 = vector.broadcast %cst_84 : f32 to vector<8x128xf32>
    %202 = arith.select %8, %201, %200 : vector<8x128xi1>, vector<8x128xf32>
    %203 = arith.addf %193, %202 : vector<8x128xf32>
    %204 = math.exp %203 : vector<8x128xf32>
    %205 = vector.broadcast %16 : vector<1x128xf32> to vector<8x128xf32>
    %206 = arith.mulf %204, %205 : vector<8x128xf32>
    %cst_85 = arith.constant dense<0.000000e+00> : vector<8xf32>
    %207 = vector.multi_reduction <add>, %206, %cst_85 [1] : vector<8x128xf32> to vector<8xf32>
    %208 = vector.shape_cast %207 : vector<8xf32> to vector<8x1xf32>
    %c0_86 = arith.constant 0 : index
    %c0_87 = arith.constant 0 : index
    %209 = vector.load %arg6[%c0_86, %c0_87] : memref<8x8xf32, #tpu.memory_space<vmem>>, vector<8x8xf32>
    %210 = tpu.concatenate %40, %64, %88, %112, %136, %160, %184, %208 in 1 : vector<8x1xf32>, vector<8x1xf32>, vector<8x1xf32>, vector<8x1xf32>, vector<8x1xf32>, vector<8x1xf32>, vector<8x1xf32>, vector<8x1xf32> -> vector<8x8xf32>
    %211 = arith.addf %209, %210 : vector<8x8xf32>
    %c0_88 = arith.constant 0 : index
    %c0_89 = arith.constant 0 : index
    %212 = vector.load %arg6[%c0_88, %c0_89] : memref<8x8xf32, #tpu.memory_space<vmem>>, vector<8x8xf32>
    tpu.vector_store %arg6[%c0_88, %c0_89], %211 {strides = array<i32>} : memref<8x8xf32, #tpu.memory_space<vmem>>, vector<8x8xf32>,
    return
  }
  func.func @transform_0(%arg0: i32, %arg1: i32, %arg2: i32) -> (i32, i32, i32) {
    %c0_i32 = arith.constant 0 : i32
    %c0_i32_0 = arith.constant 0 : i32
    return %c0_i32, %arg0, %arg2 : i32, i32, i32
  }
  func.func @transform_1(%arg0: i32, %arg1: i32, %arg2: i32) -> (i32, i32) {
    %c0_i32 = arith.constant 0 : i32
    %c0_i32_0 = arith.constant 0 : i32
    %c0_i32_1 = arith.constant 0 : i32
    return %c0_i32, %c0_i32_0 : i32, i32
  }
  func.func @transform_2(%arg0: i32, %arg1: i32, %arg2: i32) -> (i32, i32) {
    %c0_i32 = arith.constant 0 : i32
    %c0_i32_0 = arith.constant 0 : i32
    %c0_i32_1 = arith.constant 0 : i32
    return %c0_i32, %c0_i32_0 : i32, i32
  }
  func.func @transform_3(%arg0: i32, %arg1: i32, %arg2: i32) -> (i32, i32) {
    %c0_i32 = arith.constant 0 : i32
    return %arg0, %arg1 : i32, i32
  }
}

</mosaic_0001>

<bundles_post_ra>
// kernel: tpu_custom_call.1
= control target key start
LH: loop header
LB: loop body
LE: loop exit
PB: predicated region body
PF: predicated region fallthrough
CT: control target
= control target key end

     0   :  { %8 = vsyncpa [#allocation3], 0  ;;  %s612_s0 = inlined_call_operand.hbm [shape: f32[2,8,128], index: 0, kind: input, shape index: {}]   ;;  %s613_s1 = inlined_call_operand.hbm [shape: f32[2,8], index: 1, kind: input, shape index: {}]   ;;  %s614_s2 = inlined_call_operand.hbm [shape: f32[2,8], index: 2, kind: input, shape index: {}]   ;;  %s615_s3 = inlined_call_operand.hbm [shape: f32[8,8], index: 3, kind: output, shape index: {}]  }
   0x1   :  { %9 = vsyncpa [#allocation5], 0 }
   0x2   :  { %10 = vsyncpa [#allocation8], 0 }
   0x3   :  { %11 = vsyncpa [#allocation4], 0  ;;  %s16_s14 = sshll.u32 %s612_s0, 4  ;;  %s422_s15 = smov [#allocation2]   ;;  %s17_s14 = int_to_ptr.hbm [resolvable:$true] %s16_s14 }
   0x4   :  { %s18_s16 = sshll.u32 %s422_s15, 4  ;;  %s30_s19 = sshll.u32 %s613_s1, 4  ;;  %s19_s16 = int_to_ptr.vmem [resolvable:$true] %s18_s16  ;;  %s31_s19 = int_to_ptr.hbm [resolvable:$true] %s30_s19 }
   0x5   :  { %s423_s20 = smov 128   ;;  %s424_s21 = smov 8  }
   0x6   :  { %24 = dma.hbm_to_vmem [thread:$0]  %s17_s14, 256, %s19_s16, [#allocation3], %s423_s20, %s423_s20, %s424_s21  }
   0x7   :  { %s425_s22 = smov [#allocation6]   ;;  %s39_s25 = sshll.u32 %s614_s2, 4  ;;  %s40_s25 = int_to_ptr.hbm [resolvable:$true] %s39_s25 }
   0x8   :  { %33 = dma.hbm_to_smem %s31_s19, 32, %s425_s22, [#allocation5]  }
   0x9   :  { %s426_s0 = smov [#allocation7]  }
   0xa   :  { %42 = dma.hbm_to_smem %s40_s25, 32, %s426_s0, [#allocation8]  }
   0xb   :  { %414 = dma.done.wait [#allocation3], 256  }
   0xc   :  { %415 = vsyncadd [#allocation3], 4294967040 }
   0xd   :  { %416 = dma.done.wait [#allocation5], 32  }
   0xe   :  { %417 = vsyncadd [#allocation5], 4294967264 }
   0xf   :  { %418 = dma.done.wait [#allocation8], 32  }
  0x10   :  { %419 = vsyncadd [#allocation8], 4294967264 }
  0x11   :  { %55 = sfence }
  0x12   :  { %s75_s1 = sld [smem:[#allocation6]]  ;;  %v458_v0 = vld [vmem:[#allocation2] sm:$0xff]  ;;  %v462_v1 = vld [vmem:[#allocation2 + $0x8] sm:$0xff]  ;;  %v67_v9 = vlaneseq  ;;  %v427_v50 = vmov 0.0   ;;  %vm60_vm3 = vcmask 64512   ;;  %vm252_vm4 = vcmask 7168  }
  0x13   :  { %s79_s26 = sld [smem:[#allocation7]]  ;;  %vm472_vm0 = vcmp.ne.f32.partialorder %v458_v0, %v458_v0  ;;  %vm481_vm1 = vcmp.ne.f32.partialorder %v462_v1, %v462_v1  ;;  %61 = vst.msk [vmem:[#allocation9] sm:$0xff] %vm60_vm3, %v427_v50  ;;  %vm254_vm5 = vcmask 15360   ;;  %vm256_vm6 = vcmask 23552  }
  0x14   :  { %s289_s27 = sld [smem:[#allocation6 + $0x80]]  ;;  %v68_v22 = vand.u32 127, %v67_v9  ;;  %vm258_vm7 = vcmask 31744   ;;  %vm260_vm8 = vcmask 39936   ;;  %vm262_vm9 = vcmask 48128  }
  0x15   :  { %s290_s28 = sld [smem:[#allocation7 + $0x80]]  ;;  %vm264_vm10 = vcmask 56320  }
  0x16   :  { %s295_s29 = sld [smem:[#allocation6 + $0x2]]  ;;  %vm72_vm2 = vcmp.lt.s32.totalorder %v68_v22, 8 }
  0x17   :  { %s460_s30 = sld [smem:[#allocation7 + $0x2]]  ;;  %v529_v51 = vsel %vm72_vm2, 1.0, %v427_v50 }
  0x18   :  { %v76_v2 = vstv %s75_s1  ;;  %s297_s2 = sld [smem:[#allocation6 + $0x82]] }
  0x19   :  { %v77_v3 = vsub.f32 %v76_v2, %v458_v0  ;;  %s465_s4 = sld [smem:[#allocation7 + $0x82]]  ;;  %v80_v4 = vstv %s79_s26 }
  0x1a   :  { %v84_v5 = vstv %s289_s27  ;;  %s303_s5 = sld [smem:[#allocation6 + $0x4]]  ;;  %v251_v50 = vld [vmem:[#allocation9] sm:$0xff]  ;;  %s428_s27 = smov [#allocation9]  }
  0x1b   :  { %v78_v6 = vmul.f32 %v77_v3, %v77_v3  ;;  %v85_v7 = vsub.f32 %v84_v5, %v462_v1  ;;  %s468_s6 = sld [smem:[#allocation7 + $0x4]]  ;;  %v88_v10 = vstv %s290_s28  ;;  %s274_s28 = sshll.u32 %s428_s27, 4  ;;  %s275_s28 = int_to_ptr.vmem [resolvable:$true] %s274_s28 }
  0x1c   :  { %v120_v11 = vstv %s295_s29  ;;  %s305_s7 = sld [smem:[#allocation6 + $0x84]] }
  0x1d   :  { %v81_v12 = vmul.f32 %v80_v4, %v78_v6  ;;  %v86_v13 = vmul.f32 %v85_v7, %v85_v7  ;;  %v121_v14 = vsub.f32 %v120_v11, %v458_v0  ;;  %s477_s8 = sld [smem:[#allocation7 + $0x84]]  ;;  %v124_v16 = vstv %s460_s30 }
  0x1e   :  { %v128_v17 = vstv %s297_s2  ;;  %s486_s9 = sld [smem:[#allocation6 + $0x1]]  ;;  %s276_s2 = sshll.u32 %s615_s3, 4  ;;  %s277_s2 = int_to_ptr.hbm [resolvable:$true] %s276_s2 }
  0x1f   :  { %v82_v18 = vsel %vm472_vm0, 0.0, %v81_v12  ;;  %v89_v19 = vmul.f32 %v88_v10, %v86_v13  ;;  %v122_v20 = vmul.f32 %v121_v14, %v121_v14  ;;  %v129_v21 = vsub.f32 %v128_v17, %v462_v1  ;;  %s491_s10 = sld [smem:[#allocation7 + $0x1]] }
  0x20   :  { %v132_v23 = vstv %s465_s4  ;;  %v164_v24 = vstv %s303_s5  ;;  %s494_s11 = sld [smem:[#allocation6 + $0x81]] }
  0x21   :  { %v90_v25 = vsel %vm481_vm1, 0.0, %v89_v19  ;;  %v125_v26 = vmul.f32 %v124_v16, %v122_v20  ;;  %v130_v27 = vmul.f32 %v129_v21, %v129_v21  ;;  %v165_v28 = vsub.f32 %v164_v24, %v458_v0  ;;  %s499_s12 = sld [smem:[#allocation7 + $0x81]] }
  0x22   :  { %v91_v29 = vadd.f32 %v90_v25, %v82_v18  ;;  %v168_v30 = vstv %s468_s6  ;;  %v172_v31 = vstv %s305_s7  ;;  %s502_s13 = sld [smem:[#allocation6 + $0x3]] }
  0x23   :  { %v126_v32 = vsel %vm472_vm0, 0.0, %v125_v26  ;;  %v133_v33 = vmul.f32 %v132_v23, %v130_v27  ;;  %v166_v34 = vmul.f32 %v165_v28, %v165_v28  ;;  %v173_v35 = vsub.f32 %v172_v31, %v462_v1  ;;  %s507_s14 = sld [smem:[#allocation7 + $0x3]] }
  0x24   :  { %v92_v36 = vmul.f32 1.442695, %v91_v29  ;;  %v176_v37 = vstv %s477_s8  ;;  %v98_v38 = vstv %s486_s9  ;;  %s511_s15 = sld [smem:[#allocation6 + $0x83]] }
  0x25   :  { %v134_v39 = vsel %vm481_vm1, 0.0, %v133_v33  ;;  %v169_v40 = vmul.f32 %v168_v30, %v166_v34  ;;  %v174_v41 = vmul.f32 %v173_v35, %v173_v35  ;;  %v99_v42 = vsub.f32 %v98_v38, %v458_v0  ;;  %s516_s16 = sld [smem:[#allocation7 + $0x83]] }
  0x26   :  { %326 = vpow2.f32 %v92_v36  ;;  %v135_v43 = vadd.f32 %v134_v39, %v126_v32  ;;  %v102_v44 = vstv %s491_s10  ;;  %v106_v45 = vstv %s494_s11  ;;  %s520_s17 = sld [smem:[#allocation6 + $0x5]] }
  0x27   :  { %v170_v46 = vsel %vm472_vm0, 0.0, %v169_v40  ;;  %v177_v47 = vmul.f32 %v176_v37, %v174_v41  ;;  %v100_v48 = vmul.f32 %v99_v42, %v99_v42  ;;  %v107_v49 = vsub.f32 %v106_v45, %v462_v1  ;;  %s525_s18 = sld [smem:[#allocation7 + $0x5]] }
  0x28   :  { %v136_v52 = vmul.f32 1.442695, %v135_v43  ;;  %v110_v53 = vstv %s499_s12  ;;  %v142_v54 = vstv %s502_s13  ;;  %s533_s19 = sld [smem:[#allocation6 + $0x85]] }
  0x29   :  { %v178_v55 = vsel %vm481_vm1, 0.0, %v177_v47  ;;  %v103_v56 = vmul.f32 %v102_v44, %v100_v48  ;;  %v108_v57 = vmul.f32 %v107_v49, %v107_v49  ;;  %v143_v58 = vsub.f32 %v142_v54, %v458_v0  ;;  %s538_s20 = sld [smem:[#allocation7 + $0x85]] }
  0x2a   :  { %328 = vpow2.f32 %v136_v52  ;;  %v179_v59 = vadd.f32 %v178_v55, %v170_v46  ;;  %v146_v60 = vstv %s507_s14  ;;  %v150_v61 = vstv %s511_s15  ;;  %s542_s21 = sld [smem:[#allocation6 + $0x6]] }
  0x2b   :  { %v104_v62 = vsel %vm472_vm0, 0.0, %v103_v56  ;;  %v111_v63 = vmul.f32 %v110_v53, %v108_v57  ;;  %v144_v2 = vmul.f32 %v143_v58, %v143_v58  ;;  %v151_v3 = vsub.f32 %v150_v61, %v462_v1  ;;  %s547_s22 = sld [smem:[#allocation7 + $0x6]] }
  0x2c   :  { %v327_v4 = vpop.eup %326  ;;  %v180_v5 = vmul.f32 1.442695, %v179_v59  ;;  %v154_v6 = vstv %s516_s16  ;;  %v186_v7 = vstv %s520_s17  ;;  %s551_s23 = sld [smem:[#allocation6 + $0x86]] }
  0x2d   :  { %v94_v9 = vmul.f32 %v327_v4, %v529_v51  ;;  %v112_v10 = vsel %vm481_vm1, 0.0, %v111_v63  ;;  %v147_v11 = vmul.f32 %v146_v60, %v144_v2  ;;  %v152_v12 = vmul.f32 %v151_v3, %v151_v3  ;;  %s556_s24 = sld [smem:[#allocation7 + $0x86]] }
  0x2e   :  { %330 = vpow2.f32 %v180_v5  ;;  %v113_v13 = vadd.f32 %v112_v10, %v104_v62  ;;  %v187_v14 = vsub.f32 %v186_v7, %v458_v0  ;;  %v190_v16 = vstv %s525_s18  ;;  %s560_s25 = sld [smem:[#allocation6 + $0x7]] }
  0x2f   :  { %95 = vadd.xlane.f32.xlu0 %v94_v9  ;;  %v148_v17 = vsel %vm472_vm0, 0.0, %v147_v11  ;;  %v155_v18 = vmul.f32 %v154_v6, %v152_v12  ;;  %v194_v19 = vstv %s533_s19  ;;  %v198_v20 = vstv %s538_s20  ;;  %s566_s0 = sld [smem:[#allocation7 + $0x7]] }
  0x30   :  { %v329_v21 = vpop.eup %328  ;;  %v114_v22 = vmul.f32 1.442695, %v113_v13  ;;  %v188_v23 = vmul.f32 %v187_v14, %v187_v14  ;;  %v195_v24 = vsub.f32 %v194_v19, %v462_v1  ;;  %v208_v25 = vstv %s542_s21  ;;  %s570_s1 = sld [smem:[#allocation6 + $0x87]] }
  0x31   :  { %v138_v26 = vmul.f32 %v329_v21, %v529_v51  ;;  %v156_v27 = vsel %vm481_vm1, 0.0, %v155_v18  ;;  %v209_v28 = vsub.f32 %v208_v25, %v458_v0  ;;  %v212_v29 = vstv %s547_s22  ;;  %s577_s26 = sld [smem:[#allocation7 + $0x87]] }
  0x32   :  { %332 = vpow2.f32 %v114_v22  ;;  %v157_v30 = vadd.f32 %v156_v27, %v148_v17  ;;  %v191_v31 = vmul.f32 %v190_v16, %v188_v23  ;;  %v196_v32 = vmul.f32 %v195_v24, %v195_v24 }
  0x33   :  { %139 = vadd.xlane.f32.xlu1 %v138_v26  ;;  %v210_v33 = vmul.f32 %v209_v28, %v209_v28  ;;  %v216_v34 = vstv %s551_s23  ;;  %v220_v42 = vstv %s556_s24 }
  0x34   :  { %v331_v35 = vpop.eup %330  ;;  %v158_v36 = vmul.f32 1.442695, %v157_v30  ;;  %v192_v37 = vsel %vm472_vm0, 0.0, %v191_v31  ;;  %v199_v38 = vmul.f32 %v198_v20, %v196_v32  ;;  %v217_v39 = vsub.f32 %v216_v34, %v462_v1 }
  0x35   :  { %v182_v40 = vmul.f32 %v331_v35, %v529_v51  ;;  %v213_v41 = vmul.f32 %v212_v29, %v210_v33  ;;  %v230_v43 = vstv %s560_s25  ;;  %v234_v48 = vstv %s566_s0 }
  0x36   :  { %334 = vpow2.f32 %v158_v36  ;;  %v200_v44 = vsel %vm481_vm1, 0.0, %v199_v38  ;;  %v218_v45 = vmul.f32 %v217_v39, %v217_v39  ;;  %v231_v46 = vsub.f32 %v230_v43, %v458_v0 }
  0x37   :  { %183 = vadd.xlane.f32.xlu2 %v182_v40  ;;  %v201_v47 = vadd.f32 %v200_v44, %v192_v37  ;;  %v238_v49 = vstv %s570_s1  ;;  %v214_v53 = vsel %vm472_vm0, 0.0, %v213_v41  ;;  %v242_v59 = vstv %s577_s26 }
  0x38   :  { %v333_v52 = vpop.eup %332  ;;  %v221_v54 = vmul.f32 %v220_v42, %v218_v45  ;;  %v232_v55 = vmul.f32 %v231_v46, %v231_v46  ;;  %v239_v56 = vsub.f32 %v238_v49, %v462_v1 }
  0x39   :  { %v116_v57 = vmul.f32 %v333_v52, %v529_v51  ;;  %v202_v58 = vmul.f32 1.442695, %v201_v47 }
  0x3a   :  { %v222_v60 = vsel %vm481_vm1, 0.0, %v221_v54  ;;  %v235_v0 = vmul.f32 %v234_v48, %v232_v55  ;;  %v240_v61 = vmul.f32 %v239_v56, %v239_v56 }
  0x3b   :  { %117 = vadd.xlane.f32.xlu0 %v116_v57  ;;  %336 = vpow2.f32 %v202_v58  ;;  %v223_v62 = vadd.f32 %v222_v60, %v214_v53 }
  0x3c   :  { %v335_v63 = vpop.eup %334  ;;  %v236_v2 = vsel %vm472_vm0, 0.0, %v235_v0  ;;  %v243_v3 = vmul.f32 %v242_v59, %v240_v61 }
  0x3d   :  { %v160_v4 = vmul.f32 %v335_v63, %v529_v51  ;;  %v224_v1 = vmul.f32 1.442695, %v223_v62 }
  0x3e   :  { %v244_v5 = vsel %vm481_vm1, 0.0, %v243_v3 }
  0x3f   :  { %161 = vadd.xlane.f32.xlu1 %v160_v4  ;;  %338 = vpow2.f32 %v224_v1  ;;  %v245_v6 = vadd.f32 %v244_v5, %v236_v2 }
  0x41   :  { %v337_v7 = vpop.eup %336  ;;  %v246_v9 = vmul.f32 1.442695, %v245_v6 }
  0x42   :  { %v204_v10 = vmul.f32 %v337_v7, %v529_v51 }
  0x43   :  { %340 = vpow2.f32 %v246_v9 }
  0x44   :  { %205 = vadd.xlane.f32.xlu2 %v204_v10 }
  0x45   :  { %v339_v11 = vpop.eup %338 }
  0x46   :  { %v226_v8 = vmul.f32 %v339_v11, %v529_v51 }
  0x48   :  { %227 = vadd.xlane.f32.xlu0 %v226_v8 }
  0x49   :  { %v341_v12 = vpop.eup %340 }
  0x4a   :  { %v248_v13 = vmul.f32 %v341_v12, %v529_v51 }
  0x4c   :  { %249 = vadd.xlane.f32.xlu1 %v248_v13 }
  0xa2   :  { %v96_v15 = vpop.xlane.xlu0 %95 }
  0xa6   :  { %v140_v14 = vpop.xlane.xlu1 %139 }
  0xaa   :  { %v184_v17 = vpop.xlane.xlu2 %183 }
  0xae   :  { %v118_v16 = vpop.xlane.xlu0 %117 }
  0xaf   :  { %v253_v18 = vsel %vm252_vm4, %v96_v15, %v118_v16 }
  0xb0   :  { %v255_v20 = vsel %vm254_vm5, %v253_v18, %v140_v14 }
  0xb2   :  { %v162_v19 = vpop.xlane.xlu1 %161 }
  0xb3   :  { %v257_v21 = vsel %vm256_vm6, %v255_v20, %v162_v19 }
  0xb4   :  { %v259_v51 = vsel %vm258_vm7, %v257_v21, %v184_v17 }
  0xb7   :  { %v206_v22 = vpop.xlane.xlu2 %205 }
  0xb8   :  { %v261_v24 = vsel %vm260_vm8, %v259_v51, %v206_v22 }
  0xbb   :  { %v228_v23 = vpop.xlane.xlu0 %227 }
  0xbc   :  { %v263_v25 = vsel %vm262_vm9, %v261_v24, %v228_v23 }
  0xbf   :  { %v250_v26 = vpop.xlane.xlu1 %249 }
  0xc0   :  { %v265_v27 = vsel %vm264_vm10, %v263_v25, %v250_v26 }
  0xc1   :  { %v266_v28 = vadd.f32 %v265_v27, %v251_v50 }
  0xc3   :  { %268 = vst.msk [vmem:[#allocation9] sm:$0xff] %vm60_vm3, %v266_v28 }
  0xc4   :  { %279 = dma.vmem_to_hbm [thread:$0]  %s275_s28, 128, %s277_s2, [#allocation4]  }
  0xc5   :  { %420 = dma.done.wait [#allocation4], 128  }
  0xc6   :  { %421 = vsyncadd [#allocation4], 4294967168 }
  0xc7   :  { %284 = vsyncpa [#allocation3], 1 }
  0xc8   :  { %285 = vsyncpa [#allocation4], 1 }
  0xc9   :  { %286 = vsyncpa [#allocation5], 1 }
  0xca   :  { %287 = vsyncpa [#allocation8], 1 }

</bundles_post_ra>
